<compile_context>
chip_gen: v6e
topology: v6e:2x2x1
jax: 0.10.0
libtpu: 0.0.40
codegen_flags: <defaults>
</compile_context>

<pallas_src>
import jax
import jax.numpy as jnp
from jax.experimental import pallas as pl
from jax.experimental.pallas import tpu as pltpu

_LANE = 128
_WIDTH_CANDIDATES = (2048, 1024, 512, 256, 128)   # wide lane-dense last dim
_MIN_GRID_STEPS = 8                                # target pipeline depth


def _tpu_generation():
    """Best-effort TPU generation (7, 6, 5, ...) or None if unknown."""
    try:
        kind = jax.devices()[0].device_kind.lower()
    except Exception:
        return None
    for g in (7, 6, 5, 4, 3):
        if f"v{g}" in kind or f"{g}x" in kind:
            return g
    return None


def _make_swish_kernel(compute_dtype):
    def kernel(x_ref, o_ref):
        x = x_ref[...].astype(compute_dtype)
        half = jnp.asarray(0.5, dtype=compute_dtype)
        one = jnp.asarray(1.0, dtype=compute_dtype)
        # swish(x) = x * sigmoid(x) = 0.5 * x * (1 + tanh(0.5 * x))
        # -> exactly one EUP transcendental (tanh); muls/add are VALU filler.
        o_ref[...] = (half * x * (one + jnp.tanh(half * x))).astype(o_ref.dtype)
    return kernel


def _swish_2d(x2d, compute_dtype, block_rows, width):
    rows = x2d.shape[0]
    grid = (pl.cdiv(rows, block_rows),)
    return pl.pallas_call(
        _make_swish_kernel(compute_dtype),
        out_shape=jax.ShapeDtypeStruct(x2d.shape, x2d.dtype),
        grid_spec=pltpu.PrefetchScalarGridSpec(
            num_scalar_prefetch=0,
            grid=grid,
            in_specs=[pl.BlockSpec((block_rows, width), lambda i: (i, 0))],
            out_specs=pl.BlockSpec((block_rows, width), lambda i: (i, 0)),
        ),
        compiler_params=pltpu.CompilerParams(
            dimension_semantics=("parallel",),   # megacore sharding on v7x
        ),
    )(x2d)


def swish(x):
    """Elementwise Swish. Accepts any shape (e.g. NCHW); returns same shape/dtype."""
    orig_shape = x.shape
    n = x.size
    if n == 0:
        return x

    gen = _tpu_generation()
    itemsize = jnp.dtype(x.dtype).itemsize

    # bf16-native compute only where the VPU/EUP support it (v6e/v7x).
    if x.dtype == jnp.bfloat16 and gen is not None and gen >= 6:
        compute_dtype = jnp.bfloat16
    else:
        compute_dtype = jnp.float32

    # Generation-aware block size: 4 MiB on v6e/v7x (32 MiB default scoped
    # VMEM), 2 MiB elsewhere (v5e default is 16 MiB).
    block_bytes = (4 << 20) if (gen is not None and gen >= 6) else (2 << 20)

    def _xla_swish(v):
        vf = v.astype(compute_dtype)
        return (vf * jax.nn.sigmoid(vf)).astype(v.dtype)

    x_flat = jnp.ravel(x)
    n_main = (n // _LANE) * _LANE
    if n_main == 0:
        # Tiny (<128 element) input: not worth a kernel launch.
        return _xla_swish(x_flat).reshape(orig_shape)

    main = x_flat if n_main == n else x_flat[:n_main]

    # Widest lane-dense last dim that divides the aligned prefix evenly.
    width = next(w for w in _WIDTH_CANDIDATES if n_main % w == 0)
    rows = n_main // width

    # Packed-sublane multiple for the dtype: f32 -> 8, bf16 -> 16, int8 -> 32.
    sub = 8 * max(1, 4 // itemsize)
    # Rows per block targeting ~block_bytes (VMEM friendly)...
    target_rows = max(sub, (block_bytes // (width * itemsize)) // sub * sub)
    # ...but capped so big arrays get at least ~_MIN_GRID_STEPS grid steps
    # (DMA/compute overlap + 2-TC load balance). Clamped to the full row
    # extent (full-dim blocks are always legal).
    by_steps = ((pl.cdiv(rows, _MIN_GRID_STEPS) + sub - 1) // sub) * sub
    block_rows = min(target_rows, by_steps, rows)

    out_main = _swish_2d(main.reshape(rows, width), compute_dtype,
                         block_rows, width).reshape(-1)

    if n_main == n:
        return out_main.reshape(orig_shape)
    # Unaligned tail (<128 elements): plain XLA, no pad/slice HBM round trips.
    tail_out = _xla_swish(x_flat[n_main:])
    return jnp.concatenate([out_main, tail_out]).reshape(orig_shape)


if __name__ == "__main__":
    key = jax.random.PRNGKey(0)
    k1, k2, k3, k4 = jax.random.split(key, 4)

    # NCHW input matching the EfficientNet convention (small shape).
    x = jax.random.normal(k1, (2, 4, 16, 16), dtype=jnp.float32)
    y = jax.block_until_ready(swish(x))
    y_ref = x * jax.nn.sigmoid(x)
    assert y.shape == x.shape and y.dtype == x.dtype
    assert jnp.allclose(y, y_ref, atol=1e-5, rtol=1e-5)

    # Unaligned size whose 128-aligned prefix still runs through the kernel.
    x2 = jax.random.normal(k2, (2, 3, 37), dtype=jnp.float32)    # 222 elements
    y2 = jax.block_until_ready(swish(x2))
    y2_ref = x2 * jax.nn.sigmoid(x2)
    assert y2.shape == x2.shape and y2.dtype == x2.dtype
    assert jnp.allclose(y2, y2_ref, atol=1e-5, rtol=1e-5)

    # Tiny (<128 element) input: pure-XLA fallback path.
    x3 = jax.random.normal(k3, (3, 5, 7), dtype=jnp.float32)     # 105 elements
    y3 = jax.block_until_ready(swish(x3))
    y3_ref = x3 * jax.nn.sigmoid(x3)
    assert y3.shape == x3.shape and y3.dtype == x3.dtype
    assert jnp.allclose(y3, y3_ref, atol=1e-5, rtol=1e-5)

    # bf16 path (native bf16 compute on v6e/v7x, f32 compute on v5e/unknown).
    x4 = jax.random.normal(k4, (4, 8, 64), dtype=jnp.bfloat16)   # 2048 elements
    y4 = jax.block_until_ready(swish(x4))
    x4f = x4.astype(jnp.float32)
    y4_ref = x4f * jax.nn.sigmoid(x4f)
    assert y4.shape == x4.shape and y4.dtype == x4.dtype
    assert jnp.allclose(y4.astype(jnp.float32), y4_ref, atol=1e-1, rtol=1e-1)

    print("KERNEL_OK")
</pallas_src>

<mosaic_0001>
module attributes {stable_mosaic.version = 11 : i64} {
  func.func @kernel(%arg0: i32, %arg1: memref<1x2048xf32, #tpu.memory_space<vmem>>, %arg2: memref<1x2048xf32, #tpu.memory_space<vmem>>) attributes {dimension_semantics = [#tpu.dimension_semantics<parallel>], iteration_bounds = array<i64: 1>, scalar_prefetch = 0 : i64, scratch_operands = 0 : i64, tpu.core_type = #tpu.core_type<tc>, window_params = [{transform_indices = @transform_0, window_bounds = array<i64: 1, 2048>}, {transform_indices = @transform_1, window_bounds = array<i64: 1, 2048>}]} {
    %c0 = arith.constant 0 : index
    %c0_0 = arith.constant 0 : index
    %0 = vector.load %arg1[%c0, %c0_0] : memref<1x2048xf32, #tpu.memory_space<vmem>>, vector<1x2048xf32>
    %cst = arith.constant 5.000000e-01 : f32
    %1 = vector.broadcast %cst : f32 to vector<1x2048xf32>
    %2 = arith.mulf %1, %0 : vector<1x2048xf32>
    %cst_1 = arith.constant 5.000000e-01 : f32
    %3 = vector.broadcast %cst_1 : f32 to vector<1x2048xf32>
    %4 = arith.mulf %3, %0 : vector<1x2048xf32>
    %5 = math.tanh %4 : vector<1x2048xf32>
    %cst_2 = arith.constant 1.000000e+00 : f32
    %6 = vector.broadcast %cst_2 : f32 to vector<1x2048xf32>
    %7 = arith.addf %6, %5 : vector<1x2048xf32>
    %8 = arith.mulf %2, %7 : vector<1x2048xf32>
    %c0_3 = arith.constant 0 : index
    %c0_4 = arith.constant 0 : index
    %9 = vector.load %arg2[%c0_3, %c0_4] : memref<1x2048xf32, #tpu.memory_space<vmem>>, vector<1x2048xf32>
    tpu.vector_store %arg2[%c0_3, %c0_4], %8 {strides = array<i32>} : memref<1x2048xf32, #tpu.memory_space<vmem>>, vector<1x2048xf32>,
    return
  }
  func.func @transform_0(%arg0: i32) -> (i32, i32) {
    %c0_i32 = arith.constant 0 : i32
    %c0_i32_0 = arith.constant 0 : i32
    return %arg0, %c0_i32 : i32, i32
  }
  func.func @transform_1(%arg0: i32) -> (i32, i32) {
    %c0_i32 = arith.constant 0 : i32
    %c0_i32_0 = arith.constant 0 : i32
    return %arg0, %c0_i32 : i32, i32
  }
}

</mosaic_0001>

<bundles_post_ra>
// kernel: tpu_custom_call.1
= control target key start
LH: loop header
LB: loop body
LE: loop exit
PB: predicated region body
PF: predicated region fallthrough
CT: control target
= control target key end

     0   :  { %6 = vsyncpa [#allocation3], 0  ;;  %s116_s0 = inlined_call_operand.hbm [shape: f32[1,2048], index: 0, kind: input, shape index: {}]   ;;  %s117_s1 = inlined_call_operand.hbm [shape: f32[1,2048], index: 1, kind: output, shape index: {}]  }
   0x1   :  { %7 = vsyncpa [#allocation4], 0  ;;  %s98_s6 = smov [#allocation2]  }
   0x2   :  { %s14_s7 = sshll.u32 %s98_s6, 4  ;;  %s15_s7 = int_to_ptr.vmem [resolvable:$true] %s14_s7 }
   0x3   :  { %s62_s8 = scalar_lea.vmem %s15_s7, 256  ;;  %p67_p1 = scmp.lt.s32.totalorder %s15_s7, %s15_s7 }
   0x4   :  { %p63_p0 = scmp.ne.s32.totalorder %s15_s7, %s62_s8  ;;  %p68_p2 = scmp.lt.s32.totalorder %s62_s8, %s62_s8 }
   0x6   :  { %p69_p3 = por %p68_p2, %p67_p1 }
   0x8   :  { %p70_p4 = pnand %p69_p3, %p63_p0 }
   0xa   :  { %73 = shalt.err (!%p70_p4)
}
   0xb   :  { %17 = dma.hbm_to_vmem [thread:$0]  %s116_s0, 256, %s15_s7, [#allocation3]  }
   0xc   :  { %94 = dma.done.wait [#allocation3], 256  }
   0xd   :  { %95 = vsyncadd [#allocation3], 4294967040  ;;  %v21_v0 = vld [vmem:[#allocation2] sm:$0xff]  ;;  %v22_v1 = vld [vmem:[#allocation2 + $0x8] sm:$0xff]  ;;  %s99_s11 = smov [#allocation5]  }
   0xe   :  { %v23_v2 = vmul.f32 0.5, %v21_v0  ;;  %v24_v3 = vmul.f32 0.5, %v22_v1  ;;  %s39_s12 = sshll.u32 %s99_s11, 4  ;;  %s40_s12 = int_to_ptr.vmem [resolvable:$true] %s39_s12 }
   0xf   :  { %s74_s0 = scalar_lea.vmem %s40_s12, 256  ;;  %p79_p6 = scmp.lt.s32.totalorder %s40_s12, %s40_s12 }
  0x10   :  { %50 = vtanh.f32 %v23_v2  ;;  %p75_p5 = scmp.ne.s32.totalorder %s40_s12, %s74_s0  ;;  %p80_p7 = scmp.lt.s32.totalorder %s74_s0, %s74_s0 }
  0x11   :  { %52 = vtanh.f32 %v24_v3 }
  0x12   :  { %p81_p8 = por %p80_p7, %p79_p6 }
  0x14   :  { %p82_p9 = pnand %p81_p8, %p75_p5 }
  0x1d   :  { %v51_v4 = vpop.eup %50 }
  0x1e   :  { %v53_v5 = vpop.eup %52  ;;  %v27_v6 = vadd.f32 1.0, %v51_v4 }
  0x1f   :  { %v28_v7 = vadd.f32 1.0, %v53_v5 }
  0x20   :  { %v29_v8 = vmul.f32 %v27_v6, %v23_v2 }
  0x21   :  { %v30_v9 = vmul.f32 %v28_v7, %v24_v3 }
  0x22   :  { %31 = vst [vmem:[#allocation5] sm:$0xff] %v29_v8 }
  0x23   :  { %32 = vst [vmem:[#allocation5 + $0x8] sm:$0xff] %v30_v9 }
  0x24   :  { %85 = shalt.err (!%p82_p9)
}
  0x25   :  { %42 = dma.vmem_to_hbm [thread:$0]  %s40_s12, 256, %s117_s1, [#allocation4]  }
  0x26   :  { %96 = dma.done.wait [#allocation4], 256  }
  0x27   :  { %97 = vsyncadd [#allocation4], 4294967040 }
  0x28   :  { %46 = vsyncpa [#allocation3], 1 }
  0x29   :  { %47 = vsyncpa [#allocation4], 1 }

</bundles_post_ra>
